<compile_context>
chip_gen: v6e
topology: v6e:2x2x1
jax: 0.10.0
libtpu: 0.0.40
codegen_flags: <defaults>
</compile_context>

<pallas_src>
import jax
import jax.numpy as jnp
from jax.experimental import pallas as pl
from jax.experimental.pallas import tpu as pltpu


def _pos_add_kernel(x_ref, ppe_ref, o_ref):
    # x_ref / o_ref: (TB, TC) block of the flattened activations.
    # ppe_ref: (1, TC) block of the positional table in the *promoted* dtype,
    # so low-precision x accumulates at full width and is cast back on store
    # (matches torch's in-place add-with-promotion semantics).
    acc = x_ref[...].astype(ppe_ref.dtype) + ppe_ref[...]
    o_ref[...] = acc.astype(o_ref.dtype)


def _vmem_capacity_bytes() -> int:
    try:
        return int(pltpu.get_tpu_info().vmem_capacity_bytes)
    except Exception:
        return 64 << 20  # conservative fallback: assume v7x-sized VMEM


def _choose_tiles(batch, width, itemsize, sublane, block_budget, min_row_blocks):
    """Pick (tb, tc): batch rows and lane-dense columns per block."""
    row_bytes = width * itemsize

    # Lane (last-dim) tiling only when even a minimal sublane-row block at full
    # width would blow the per-block budget (large N*E).  Chunks stay >= 512
    # lanes and 128-aligned so DMAs stay large and stores stay unmasked.
    if sublane * row_bytes <= block_budget or width <= 512:
        tc = width
    else:
        lanes = block_budget // (sublane * itemsize)
        tc = min(max(512, (lanes // 128) * 128), width)

    # Rows per block from the byte budget ...
    tb = max(block_budget // (tc * itemsize), 1)
    # ... capped so we get >= min_row_blocks grid steps along batch when the
    # batch allows it (pipeline overlap + v7x megacore sharding of the
    # "parallel" axis).
    tb = min(tb, pl.cdiv(batch, min_row_blocks))

    if tb >= batch:
        tb = batch                                   # single full-batch block
    elif tb <= sublane:
        tb = sublane if batch > sublane else batch   # alignment floor
    else:
        tb = (tb // sublane) * sublane               # sublane-aligned rows
    return tb, tc


def bia_pos_encoding(x: jax.Array, ppe: jax.Array, *,
                     target_block_bytes=None,
                     min_row_blocks: int = 4,
                     donate_x: bool = True) -> jax.Array:
    """Adds learnable positional embeddings: out[b] = x[b] + ppe."""
    B, N, E = x.shape
    assert ppe.shape == (N, E), f"ppe shape {ppe.shape} != {(N, E)}"
    C = N * E
    itemsize = jnp.dtype(x.dtype).itemsize
    sublane = max(8, 32 // itemsize)  # 8 for f32, 16 for bf16, 32 for int8

    # Add in the promoted dtype (torch's in-place `x += ppe` promotes,
    # accumulates, then casts back to x's dtype).
    compute_dtype = jnp.promote_types(x.dtype, ppe.dtype)
    ppe_itemsize = jnp.dtype(compute_dtype).itemsize

    # Lane-dense 2-D views; row-major reshape preserves broadcast semantics:
    # x2[b, n*E + e] + ppe2[0, n*E + e] == x[b, n, e] + ppe[n, e].
    x2 = x.reshape(B, C)
    ppe2 = ppe.astype(compute_dtype).reshape(1, C)

    # Generation-aware sizing: never ask for more than ~half of VMEM; bigger
    # blocks only on v7x (64 MiB VMEM, ~3.2 TB/s HBM) where the ~0.35us
    # per-grid-step overhead is a meaningful fraction of the per-block HBM time.
    capacity = _vmem_capacity_bytes()
    vmem_cap = min(capacity // 2, 64 << 20)
    if target_block_bytes is None:
        target_block_bytes = (8 << 20) if capacity <= (64 << 20) else (4 << 20)
    per_block_cap = max((vmem_cap - (2 << 20)) // 4, 1 << 19)
    block_budget = min(int(target_block_bytes), per_block_cap)

    tb, tc = _choose_tiles(B, C, itemsize, sublane, block_budget, min_row_blocks)
    grid = (pl.cdiv(B, tb), pl.cdiv(C, tc))

    # VMEM budget: x and out blocks double-buffered (~4 live blocks), ppe block
    # double-buffered, plus slack.  (ppe's block index is constant along the
    # batch axis, so Pallas skips re-DMAing it between row steps; a
    # pipeline_mode=pl.Buffered(1) hint would only trim one tiny buffer.)
    block_bytes = tb * tc * itemsize
    needed = 4 * block_bytes + 2 * tc * ppe_itemsize + (1 << 20)
    vmem_limit = int(min(max(needed, 4 << 20), vmem_cap))

    out2 = pl.pallas_call(
        _pos_add_kernel,
        out_shape=jax.ShapeDtypeStruct((B, C), x.dtype),
        grid_spec=pltpu.PrefetchScalarGridSpec(
            num_scalar_prefetch=0,
            grid=grid,
            in_specs=[
                # Activations: TB batch rows x TC lane-dense columns per step.
                pl.BlockSpec((tb, tc), lambda i, j: (i, j)),
                # Positional table: same row, lane chunk follows j; broadcasts
                # naturally over the (tb, tc) activation block (pure VPU add).
                pl.BlockSpec((1, tc), lambda i, j: (0, j)),
            ],
            out_specs=pl.BlockSpec((tb, tc), lambda i, j: (i, j)),
        ),
        compiler_params=pltpu.CompilerParams(
            dimension_semantics=("parallel", "parallel"),
            vmem_limit_bytes=vmem_limit,
        ),
        # Mirror torch's in-place `x += ppe`: alias the output onto x's buffer
        # when the caller donates it (XLA inserts a copy otherwise).
        input_output_aliases={0: 0} if donate_x else {},
    )(x2, ppe2)

    return out2.reshape(B, N, E)


if __name__ == "__main__":
    # Module config: n_emb=32, p_size=4, im_size=16 -> num_patches = (16//4)**2 = 16
    n_emb, p_size, im_size = 32, 4, 16
    num_patches = (im_size // p_size) ** 2
    batch = 2

    key = jax.random.PRNGKey(0)
    k_ppe, k_x, k_xb, k_xc, k_xh = jax.random.split(key, 5)

    # Deterministic "parameter" init (stands in for torch.randn in __init__).
    ppe = jax.random.normal(k_ppe, (num_patches, n_emb), dtype=jnp.float32)
    x = jax.random.normal(k_x, (batch, num_patches, n_emb), dtype=jnp.float32)

    ref = x + ppe[None, :, :]  # computed before the (possibly aliased) call
    out = jax.block_until_ready(bia_pos_encoding(x, ppe))
    assert out.shape == x.shape and out.dtype == x.dtype
    assert jnp.allclose(out, ref, atol=1e-6), "mismatch vs reference"

    # Multi-row-block path (grid[0] > 1) with a tiny block budget.
    xb = jax.random.normal(k_xb, (16, num_patches, n_emb), dtype=jnp.float32)
    refb = xb + ppe[None, :, :]
    outb = jax.block_until_ready(
        bia_pos_encoding(xb, ppe, target_block_bytes=16 * 1024))
    assert jnp.allclose(outb, refb, atol=1e-6), "mismatch (multi row block)"

    # Lane-tiling fallback path (grid[1] > 1): bigger image -> wider rows (C=2048).
    n_patches_big = (32 // p_size) ** 2
    ppe_big = jax.random.normal(k_ppe, (n_patches_big, n_emb), dtype=jnp.float32)
    xc = jax.random.normal(k_xc, (8, n_patches_big, n_emb), dtype=jnp.float32)
    refc = xc + ppe_big[None, :, :]
    outc = jax.block_until_ready(
        bia_pos_encoding(xc, ppe_big, target_block_bytes=16 * 1024))
    assert jnp.allclose(outc, refc, atol=1e-6), "mismatch (lane-tiled)"

    # Mixed precision: bf16 activations + f32 table accumulate in f32 and are
    # cast back on the store (matches torch's in-place promotion semantics).
    xh = jax.random.normal(k_xh, (batch, num_patches, n_emb), dtype=jnp.bfloat16)
    refh = (xh.astype(jnp.float32) + ppe[None, :, :]).astype(jnp.bfloat16)
    outh = jax.block_until_ready(bia_pos_encoding(xh, ppe))
    assert outh.dtype == jnp.bfloat16
    assert jnp.allclose(outh.astype(jnp.float32), refh.astype(jnp.float32),
                        atol=1e-2), "mismatch (bf16 promoted add)"

    print("KERNEL_OK")
</pallas_src>

<mosaic_0001>
module attributes {stable_mosaic.version = 11 : i64} {
  func.func @_pos_add_kernel(%arg0: i32, %arg1: i32, %arg2: memref<2x512xf32, #tpu.memory_space<vmem>>, %arg3: memref<1x512xf32, #tpu.memory_space<vmem>>, %arg4: memref<2x512xf32, #tpu.memory_space<vmem>>) attributes {dimension_semantics = [#tpu.dimension_semantics<parallel>, #tpu.dimension_semantics<parallel>], iteration_bounds = array<i64: 1, 1>, scalar_prefetch = 0 : i64, scratch_operands = 0 : i64, tpu.core_type = #tpu.core_type<tc>, window_params = [{transform_indices = @transform_0, window_bounds = array<i64: 2, 512>}, {transform_indices = @transform_1, window_bounds = array<i64: 1, 512>}, {transform_indices = @transform_2, window_bounds = array<i64: 2, 512>}]} {
    %c0 = arith.constant 0 : index
    %c0_0 = arith.constant 0 : index
    %0 = vector.load %arg2[%c0, %c0_0] : memref<2x512xf32, #tpu.memory_space<vmem>>, vector<2x512xf32>
    %c0_1 = arith.constant 0 : index
    %c0_2 = arith.constant 0 : index
    %1 = vector.load %arg3[%c0_1, %c0_2] : memref<1x512xf32, #tpu.memory_space<vmem>>, vector<1x512xf32>
    %2 = vector.broadcast %1 : vector<1x512xf32> to vector<2x512xf32>
    %3 = arith.addf %0, %2 : vector<2x512xf32>
    %c0_3 = arith.constant 0 : index
    %c0_4 = arith.constant 0 : index
    %4 = vector.load %arg4[%c0_3, %c0_4] : memref<2x512xf32, #tpu.memory_space<vmem>>, vector<2x512xf32>
    tpu.vector_store %arg4[%c0_3, %c0_4], %3 {strides = array<i32>} : memref<2x512xf32, #tpu.memory_space<vmem>>, vector<2x512xf32>,
    return
  }
  func.func @transform_0(%arg0: i32, %arg1: i32) -> (i32, i32) {
    %c0_i32 = arith.constant 0 : i32
    return %arg0, %arg1 : i32, i32
  }
  func.func @transform_1(%arg0: i32, %arg1: i32) -> (i32, i32) {
    %c0_i32 = arith.constant 0 : i32
    %c0_i32_0 = arith.constant 0 : i32
    return %c0_i32, %arg1 : i32, i32
  }
  func.func @transform_2(%arg0: i32, %arg1: i32) -> (i32, i32) {
    %c0_i32 = arith.constant 0 : i32
    return %arg0, %arg1 : i32, i32
  }
}

</mosaic_0001>

<bundles_post_ra>
// kernel: tpu_custom_call.1
= control target key start
LH: loop header
LB: loop body
LE: loop exit
PB: predicated region body
PF: predicated region fallthrough
CT: control target
= control target key end

     0   :  { %7 = vsyncpa [#allocation3], 0  ;;  %s152_s0 = inlined_call_operand.hbm [shape: f32[2,512], index: 0, kind: input, shape index: {}, may-alias: {0,2}]   ;;  %s153_s1 = inlined_call_operand.vmem [shape: f32[1,512], index: 1, kind: input, shape index: {}]   ;;  %s154_s2 = inlined_call_operand.hbm [shape: f32[2,512], index: 2, kind: output, shape index: {}, may-alias: {0,2}]  }
   0x1   :  { %8 = vsyncpa [#allocation4], 0  ;;  %s125_s9 = smov [#allocation2]  }
   0x2   :  { %s15_s10 = sshll.u32 %s125_s9, 4  ;;  %s16_s10 = int_to_ptr.vmem [resolvable:$true] %s15_s10 }
   0x3   :  { %s89_s11 = scalar_lea.vmem %s16_s10, 128  ;;  %p94_p1 = scmp.lt.s32.totalorder %s16_s10, %s16_s10 }
   0x4   :  { %p90_p0 = scmp.ne.s32.totalorder %s16_s10, %s89_s11  ;;  %p95_p2 = scmp.lt.s32.totalorder %s89_s11, %s89_s11 }
   0x6   :  { %p96_p3 = por %p95_p2, %p94_p1 }
   0x8   :  { %p97_p4 = pnand %p96_p3, %p90_p0 }
   0xa   :  { %100 = shalt.err (!%p97_p4)
}
   0xb   :  { %18 = dma.hbm_to_vmem [thread:$0]  %s152_s0, 128, %s16_s10, [#allocation3]  }
   0xc   :  { %121 = dma.done.wait [#allocation3], 128  }
   0xd   :  { %122 = vsyncadd [#allocation3], 4294967168  ;;  %v27_v0 = vlaneseq  ;;  %v126_v1 = vmov 1983009808   ;;  %v25_v9 = vld [vmem:[%s153_s1] sm:$0xf] }
   0xe   :  { %v46_v2 = vunpack.c.l.s4 %v126_v1  ;;  %v24_v19 = vld [vmem:[#allocation2] sm:$0xff]  ;;  %s127_s0 = smov [#allocation5]  }
   0xf   :  { %v28_v3 = vshrl.u32 %v27_v0, 7  ;;  %s69_s16 = sshll.u32 %s127_s0, 4  ;;  %s70_s16 = int_to_ptr.vmem [resolvable:$true] %s69_s16 }
  0x10   :  { %v47_v4 = vunpack.c.0.s8 %v46_v2  ;;  %s101_s17 = scalar_lea.vmem %s70_s16, 128  ;;  %p106_p6 = scmp.lt.s32.totalorder %s70_s16, %s70_s16 }
  0x11   :  { %v29_v5 = vsub.s32 0, %v28_v3  ;;  %v33_v6 = vsub.s32 1, %v28_v3  ;;  %v37_v7 = vsub.s32 2, %v28_v3  ;;  %v41_v8 = vsub.s32 3, %v28_v3  ;;  %p102_p5 = scmp.ne.s32.totalorder %s70_s16, %s101_s17  ;;  %p107_p7 = scmp.lt.s32.totalorder %s101_s17, %s101_s17 }
  0x12   :  { %v50_v10 = vsub.s32 %v47_v4, %v28_v3 }
  0x13   :  { %v30_v11 = vrot.slane %v25_v9, %v29_v5  ;;  %v34_v12 = vrot.slane %v25_v9, %v33_v6  ;;  %v38_v13 = vrot.slane %v25_v9, %v37_v7  ;;  %v42_v14 = vrot.slane %v25_v9, %v41_v8  ;;  %p108_p8 = por %p107_p7, %p106_p6 }
  0x15   :  { %v43_v15 = vcombine.low %v30_v11, %v34_v12  ;;  %v44_v16 = vcombine.low %v38_v13, %v42_v14  ;;  %p109_p9 = pnand %p108_p8, %p102_p5 }
  0x17   :  { %v51_v17 = vrot.slane %v43_v15, %v50_v10  ;;  %v58_v18 = vrot.slane %v44_v16, %v50_v10 }
  0x19   :  { %v59_v20 = vcombine.low %v51_v17, %v58_v18 }
  0x1b   :  { %v61_v21 = vadd.f32 %v59_v20, %v24_v19 }
  0x1d   :  { %62 = vst [vmem:[#allocation5] sm:$0xff] %v61_v21 }
  0x1e   :  { %112 = shalt.err (!%p109_p9)
}
  0x1f   :  { %72 = dma.vmem_to_hbm [thread:$0]  %s70_s16, 128, %s154_s2, [#allocation4]  }
  0x20   :  { %123 = dma.done.wait [#allocation4], 128  }
  0x21   :  { %124 = vsyncadd [#allocation4], 4294967168 }
  0x22   :  { %76 = vsyncpa [#allocation3], 1 }
  0x23   :  { %77 = vsyncpa [#allocation4], 1 }

</bundles_post_ra>
